<compile_context>
chip_gen: v7x
topology: tpu7x:2x2x1
jax: 0.10.0
libtpu: 0.0.40
codegen_flags: <defaults>
</compile_context>

<pallas_src>
import functools

import jax
import jax.numpy as jnp
from jax.experimental import pallas as pl
from jax.experimental.pallas import tpu as pltpu

_NEG = -1.0e30  # "minus infinity" stand-in; assumes real logits are finite and > -1e30.


def _topk_ce_kernel(gmax_ref, y_ref, x_ref, o_ref, *, k):
    """Per-row top-k CE loss for one (tile_n, M) block of logits.

    gmax_ref: (1, 1) f32 in SMEM   -- global max of x (exact tie-break parity)
    y_ref:    (tile_n, 1) int32    -- labels
    x_ref:    (tile_n, M) logits   -- native dtype
    o_ref:    (8, tile_n) f32      -- per-row loss, lane-major (row 0; rows 1..7 dup)
    """
    xs = x_ref[...]                                     # (tn, m), native dtype
    y = y_ref[...]                                      # (tn, 1) int32
    tn, m = xs.shape
    neg = jnp.asarray(_NEG, dtype=xs.dtype)

    col = jax.lax.broadcasted_iota(jnp.int32, (tn, m), 1)
    onehot = col == y                                   # (tn, m) bool

    # Scatter the global max into the target column (fused; no separate z copy).
    gmax = gmax_ref[0, 0].astype(xs.dtype)
    zw = jnp.where(onehot, gmax, xs)

    # k-step extraction of the top-k entries of zw per row.  Tie-break matches a
    # stable ascending sort: among equal values the LARGEST index is dropped first.
    for _ in range(k):
        row_max = jnp.max(zw, axis=-1, keepdims=True)                       # (tn, 1)
        arg = jnp.max(jnp.where(zw == row_max, col, -1),
                      axis=-1, keepdims=True)                               # (tn, 1)
        zw = jnp.where(col == arg, neg, zw)

    bottom = zw > neg          # the (M - k) smallest entries of z (never dropped)

    # Overflow-safe: log(sum_bottom exp(a) + 1) = shift + log(sum exp(a-shift) + exp(-shift))
    xf = xs.astype(jnp.float32)
    s_y = jnp.sum(jnp.where(onehot, xf, 0.0), axis=-1, keepdims=True)       # (tn, 1)
    a = xf - s_y
    vals = jnp.where(bottom, a, jnp.float32(_NEG))
    shift = jnp.maximum(jnp.max(vals, axis=-1, keepdims=True), 0.0)         # (tn, 1)
    ssum = jnp.sum(jnp.exp(vals - shift), axis=-1, keepdims=True) + jnp.exp(-shift)
    loss = shift + jnp.log(ssum)                                            # (tn, 1)

    # Lane-dense store: relayout (tn, 1) -> (1, tn), replicate over 8 sublanes so the
    # output block stays (8, tile_n)-aligned for any number of row tiles.
    o_ref[...] = jnp.broadcast_to(loss.reshape(1, tn), (8, tn))


def topk_ce(x, y, k, *, max_tile_n=512, vmem_budget_bytes=24 * 1024 * 1024):
    """x: (N, M) float logits, y: (N,) int labels. Returns scalar float32 loss."""
    n, m = x.shape
    assert 0 < k < m

    row_align = 8 if x.dtype.itemsize == 4 else 16       # f32 sublane=8, bf16/f16=16
    # VMEM-budgeted row tile: double-buffered input block + ~8 live f32 temps per row.
    bytes_per_row = m * (2 * x.dtype.itemsize + 8 * 4)
    tile_n = (vmem_budget_bytes // bytes_per_row) // row_align * row_align
    tile_n = int(max(row_align,
                     min(tile_n, max_tile_n, pl.cdiv(n, row_align) * row_align)))
    num_tiles = pl.cdiv(n, tile_n)

    # Global max over the real logits (cross-row dependency; one extra HBM read of x,
    # kept so exact-tie behavior matches the PyTorch stable-sort reference).
    gmax = jnp.max(x).astype(jnp.float32).reshape(1, 1)
    y2 = y.astype(jnp.int32).reshape(n, 1)

    cost = pl.CostEstimate(
        flops=(6 * k + 12) * n * m,
        transcendentals=n * (m + 2),
        bytes_accessed=n * m * x.dtype.itemsize + n * 4 + num_tiles * 8 * tile_n * 4,
    )

    out = pl.pallas_call(
        functools.partial(_topk_ce_kernel, k=k),
        out_shape=jax.ShapeDtypeStruct((num_tiles * 8, tile_n), jnp.float32),
        grid=(num_tiles,),
        in_specs=[
            pl.BlockSpec(memory_space=pltpu.SMEM),                # gmax (1, 1)
            pl.BlockSpec((tile_n, 1), lambda i: (i, 0)),          # labels
            pl.BlockSpec((tile_n, m), lambda i: (i, 0)),          # logits, block = full M
        ],
        out_specs=pl.BlockSpec((8, tile_n), lambda i: (i, 0)),
        compiler_params=pltpu.CompilerParams(
            dimension_semantics=("parallel",),
            vmem_limit_bytes=48 * 1024 * 1024,
        ),
        cost_estimate=cost,
    )(gmax, y2, x)

    # Row 0 of every (8, tile_n) block carries the losses; drop ragged-tile garbage rows.
    per_row = out[::8].reshape(-1)[:n]
    return jnp.mean(per_row)


def topk_ce_ref(x, y, k):
    """Pure-JAX reference mirroring the PyTorch forward."""
    n, m = x.shape
    xf = x.astype(jnp.float32)
    s_y = jnp.take_along_axis(xf, y.reshape(-1, 1).astype(jnp.int32), axis=-1)
    a = xf - s_y
    z = xf.at[jnp.arange(n), y].set(jnp.max(xf))
    idx = jnp.argsort(z, axis=-1)                        # stable ascending
    s_bottom = jnp.take_along_axis(a, idx[:, : m - k], axis=-1)
    return jnp.mean(jnp.log(jnp.sum(jnp.exp(s_bottom), axis=-1) + 1.0))


if __name__ == "__main__":
    key = jax.random.PRNGKey(0)
    k1x, k1y, k2x, k2y = jax.random.split(key, 4)

    # Case 1: single ragged row tile, non-128 class dim (batch=13, classes=100, k=5).
    x1 = jax.random.normal(k1x, (13, 100), dtype=jnp.float32)
    y1 = jax.random.randint(k1y, (13,), 0, 100, dtype=jnp.int32)
    out1 = jax.block_until_ready(topk_ce(x1, y1, 5))
    ref1 = jax.block_until_ready(topk_ce_ref(x1, y1, 5))
    assert jnp.allclose(out1, ref1, rtol=1e-5, atol=1e-5), (out1, ref1)

    # Case 2: multiple row tiles with a ragged last tile (batch=1030, classes=100, k=3).
    x2 = jax.random.normal(k2x, (1030, 100), dtype=jnp.float32)
    y2 = jax.random.randint(k2y, (1030,), 0, 100, dtype=jnp.int32)
    out2 = jax.block_until_ready(topk_ce(x2, y2, 3))
    ref2 = jax.block_until_ready(topk_ce_ref(x2, y2, 3))
    assert jnp.allclose(out2, ref2, rtol=1e-5, atol=1e-5), (out2, ref2)

    print("KERNEL_OK")
</pallas_src>

<mosaic_0001>
module attributes {stable_mosaic.version = 11 : i64} {
  func.func @_topk_ce_kernel(%arg0: i32, %arg1: memref<1x1xf32, #tpu.memory_space<smem>>, %arg2: memref<16x1xi32, #tpu.memory_space<vmem>>, %arg3: memref<16x100xf32, #tpu.memory_space<vmem>>, %arg4: memref<8x16xf32, #tpu.memory_space<vmem>>) attributes {dimension_semantics = [#tpu.dimension_semantics<parallel>], iteration_bounds = array<i64: 1>, scalar_prefetch = 0 : i64, scratch_operands = 0 : i64, tpu.core_type = #tpu.core_type<tc>, window_params = [{transform_indices = @transform_0, window_bounds = array<i64: 1, 1>}, {transform_indices = @transform_1, window_bounds = array<i64: 16, 1>}, {transform_indices = @transform_2, window_bounds = array<i64: 16, 100>}, {transform_indices = @transform_3, window_bounds = array<i64: 8, 16>}]} {
    %c0 = arith.constant 0 : index
    %c0_0 = arith.constant 0 : index
    %0 = vector.load %arg3[%c0, %c0_0] : memref<16x100xf32, #tpu.memory_space<vmem>>, vector<16x100xf32>
    %c0_1 = arith.constant 0 : index
    %c0_2 = arith.constant 0 : index
    %1 = vector.load %arg2[%c0_1, %c0_2] : memref<16x1xi32, #tpu.memory_space<vmem>>, vector<16x1xi32>
    %2 = tpu.iota {dimensions = array<i32: 1>} : vector<16x100xi32>
    %3 = vector.broadcast %1 : vector<16x1xi32> to vector<16x100xi32>
    %4 = arith.cmpi eq, %2, %3 : vector<16x100xi32>
    %c0_3 = arith.constant 0 : index
    %c0_4 = arith.constant 0 : index
    %5 = memref.load %arg1[%c0_3, %c0_4] : memref<1x1xf32, #tpu.memory_space<smem>>
    %6 = vector.broadcast %5 : f32 to vector<16x100xf32>
    %7 = arith.select %4, %6, %0 : vector<16x100xi1>, vector<16x100xf32>
    %cst = arith.constant dense<0xFF800000> : vector<16xf32>
    %8 = vector.multi_reduction <maximumf>, %7, %cst [1] : vector<16x100xf32> to vector<16xf32>
    %9 = vector.shape_cast %8 : vector<16xf32> to vector<16x1xf32>
    %10 = vector.broadcast %9 : vector<16x1xf32> to vector<16x100xf32>
    %11 = arith.cmpf oeq, %7, %10 : vector<16x100xf32>
    %c-1_i32 = arith.constant -1 : i32
    %12 = vector.broadcast %c-1_i32 : i32 to vector<16x100xi32>
    %13 = arith.select %11, %2, %12 : vector<16x100xi1>, vector<16x100xi32>
    %cst_5 = arith.constant dense<-2147483648> : vector<16xi32>
    %14 = vector.multi_reduction <maxsi>, %13, %cst_5 [1] : vector<16x100xi32> to vector<16xi32>
    %15 = vector.shape_cast %14 : vector<16xi32> to vector<16x1xi32>
    %16 = vector.broadcast %15 : vector<16x1xi32> to vector<16x100xi32>
    %17 = arith.cmpi eq, %2, %16 : vector<16x100xi32>
    %cst_6 = arith.constant -1.000000e+30 : f32
    %18 = vector.broadcast %cst_6 : f32 to vector<16x100xf32>
    %19 = arith.select %17, %18, %7 : vector<16x100xi1>, vector<16x100xf32>
    %cst_7 = arith.constant dense<0xFF800000> : vector<16xf32>
    %20 = vector.multi_reduction <maximumf>, %19, %cst_7 [1] : vector<16x100xf32> to vector<16xf32>
    %21 = vector.shape_cast %20 : vector<16xf32> to vector<16x1xf32>
    %22 = vector.broadcast %21 : vector<16x1xf32> to vector<16x100xf32>
    %23 = arith.cmpf oeq, %19, %22 : vector<16x100xf32>
    %c-1_i32_8 = arith.constant -1 : i32
    %24 = vector.broadcast %c-1_i32_8 : i32 to vector<16x100xi32>
    %25 = arith.select %23, %2, %24 : vector<16x100xi1>, vector<16x100xi32>
    %cst_9 = arith.constant dense<-2147483648> : vector<16xi32>
    %26 = vector.multi_reduction <maxsi>, %25, %cst_9 [1] : vector<16x100xi32> to vector<16xi32>
    %27 = vector.shape_cast %26 : vector<16xi32> to vector<16x1xi32>
    %28 = vector.broadcast %27 : vector<16x1xi32> to vector<16x100xi32>
    %29 = arith.cmpi eq, %2, %28 : vector<16x100xi32>
    %cst_10 = arith.constant -1.000000e+30 : f32
    %30 = vector.broadcast %cst_10 : f32 to vector<16x100xf32>
    %31 = arith.select %29, %30, %19 : vector<16x100xi1>, vector<16x100xf32>
    %cst_11 = arith.constant dense<0xFF800000> : vector<16xf32>
    %32 = vector.multi_reduction <maximumf>, %31, %cst_11 [1] : vector<16x100xf32> to vector<16xf32>
    %33 = vector.shape_cast %32 : vector<16xf32> to vector<16x1xf32>
    %34 = vector.broadcast %33 : vector<16x1xf32> to vector<16x100xf32>
    %35 = arith.cmpf oeq, %31, %34 : vector<16x100xf32>
    %c-1_i32_12 = arith.constant -1 : i32
    %36 = vector.broadcast %c-1_i32_12 : i32 to vector<16x100xi32>
    %37 = arith.select %35, %2, %36 : vector<16x100xi1>, vector<16x100xi32>
    %cst_13 = arith.constant dense<-2147483648> : vector<16xi32>
    %38 = vector.multi_reduction <maxsi>, %37, %cst_13 [1] : vector<16x100xi32> to vector<16xi32>
    %39 = vector.shape_cast %38 : vector<16xi32> to vector<16x1xi32>
    %40 = vector.broadcast %39 : vector<16x1xi32> to vector<16x100xi32>
    %41 = arith.cmpi eq, %2, %40 : vector<16x100xi32>
    %cst_14 = arith.constant -1.000000e+30 : f32
    %42 = vector.broadcast %cst_14 : f32 to vector<16x100xf32>
    %43 = arith.select %41, %42, %31 : vector<16x100xi1>, vector<16x100xf32>
    %cst_15 = arith.constant dense<0xFF800000> : vector<16xf32>
    %44 = vector.multi_reduction <maximumf>, %43, %cst_15 [1] : vector<16x100xf32> to vector<16xf32>
    %45 = vector.shape_cast %44 : vector<16xf32> to vector<16x1xf32>
    %46 = vector.broadcast %45 : vector<16x1xf32> to vector<16x100xf32>
    %47 = arith.cmpf oeq, %43, %46 : vector<16x100xf32>
    %c-1_i32_16 = arith.constant -1 : i32
    %48 = vector.broadcast %c-1_i32_16 : i32 to vector<16x100xi32>
    %49 = arith.select %47, %2, %48 : vector<16x100xi1>, vector<16x100xi32>
    %cst_17 = arith.constant dense<-2147483648> : vector<16xi32>
    %50 = vector.multi_reduction <maxsi>, %49, %cst_17 [1] : vector<16x100xi32> to vector<16xi32>
    %51 = vector.shape_cast %50 : vector<16xi32> to vector<16x1xi32>
    %52 = vector.broadcast %51 : vector<16x1xi32> to vector<16x100xi32>
    %53 = arith.cmpi eq, %2, %52 : vector<16x100xi32>
    %cst_18 = arith.constant -1.000000e+30 : f32
    %54 = vector.broadcast %cst_18 : f32 to vector<16x100xf32>
    %55 = arith.select %53, %54, %43 : vector<16x100xi1>, vector<16x100xf32>
    %cst_19 = arith.constant dense<0xFF800000> : vector<16xf32>
    %56 = vector.multi_reduction <maximumf>, %55, %cst_19 [1] : vector<16x100xf32> to vector<16xf32>
    %57 = vector.shape_cast %56 : vector<16xf32> to vector<16x1xf32>
    %58 = vector.broadcast %57 : vector<16x1xf32> to vector<16x100xf32>
    %59 = arith.cmpf oeq, %55, %58 : vector<16x100xf32>
    %c-1_i32_20 = arith.constant -1 : i32
    %60 = vector.broadcast %c-1_i32_20 : i32 to vector<16x100xi32>
    %61 = arith.select %59, %2, %60 : vector<16x100xi1>, vector<16x100xi32>
    %cst_21 = arith.constant dense<-2147483648> : vector<16xi32>
    %62 = vector.multi_reduction <maxsi>, %61, %cst_21 [1] : vector<16x100xi32> to vector<16xi32>
    %63 = vector.shape_cast %62 : vector<16xi32> to vector<16x1xi32>
    %64 = vector.broadcast %63 : vector<16x1xi32> to vector<16x100xi32>
    %65 = arith.cmpi eq, %2, %64 : vector<16x100xi32>
    %cst_22 = arith.constant -1.000000e+30 : f32
    %66 = vector.broadcast %cst_22 : f32 to vector<16x100xf32>
    %67 = arith.select %65, %66, %55 : vector<16x100xi1>, vector<16x100xf32>
    %cst_23 = arith.constant -1.000000e+30 : f32
    %68 = vector.broadcast %cst_23 : f32 to vector<16x100xf32>
    %69 = arith.cmpf ogt, %67, %68 : vector<16x100xf32>
    %cst_24 = arith.constant 0.000000e+00 : f32
    %70 = vector.broadcast %cst_24 : f32 to vector<16x100xf32>
    %71 = arith.select %4, %0, %70 : vector<16x100xi1>, vector<16x100xf32>
    %cst_25 = arith.constant dense<0.000000e+00> : vector<16xf32>
    %72 = vector.multi_reduction <add>, %71, %cst_25 [1] : vector<16x100xf32> to vector<16xf32>
    %73 = vector.shape_cast %72 : vector<16xf32> to vector<16x1xf32>
    %74 = vector.broadcast %73 : vector<16x1xf32> to vector<16x100xf32>
    %75 = arith.subf %0, %74 : vector<16x100xf32>
    %cst_26 = arith.constant -1.000000e+30 : f32
    %76 = vector.broadcast %cst_26 : f32 to vector<16x100xf32>
    %77 = arith.select %69, %75, %76 : vector<16x100xi1>, vector<16x100xf32>
    %cst_27 = arith.constant dense<0xFF800000> : vector<16xf32>
    %78 = vector.multi_reduction <maximumf>, %77, %cst_27 [1] : vector<16x100xf32> to vector<16xf32>
    %79 = vector.shape_cast %78 : vector<16xf32> to vector<16x1xf32>
    %cst_28 = arith.constant 0.000000e+00 : f32
    %80 = vector.broadcast %cst_28 : f32 to vector<16x1xf32>
    %81 = arith.maximumf %79, %80 : vector<16x1xf32>
    %82 = vector.broadcast %81 : vector<16x1xf32> to vector<16x100xf32>
    %83 = arith.subf %77, %82 : vector<16x100xf32>
    %84 = math.exp %83 : vector<16x100xf32>
    %cst_29 = arith.constant dense<0.000000e+00> : vector<16xf32>
    %85 = vector.multi_reduction <add>, %84, %cst_29 [1] : vector<16x100xf32> to vector<16xf32>
    %86 = vector.shape_cast %85 : vector<16xf32> to vector<16x1xf32>
    %cst_30 = arith.constant 0.000000e+00 : f32
    %87 = vector.broadcast %cst_30 : f32 to vector<16x1xf32>
    %88 = arith.subf %87, %81 : vector<16x1xf32>
    %89 = math.exp %88 : vector<16x1xf32>
    %90 = arith.addf %86, %89 : vector<16x1xf32>
    %91 = math.log %90 : vector<16x1xf32>
    %92 = arith.addf %81, %91 : vector<16x1xf32>
    %93 = vector.shape_cast %92 : vector<16x1xf32> to vector<1x16xf32>
    %94 = vector.shape_cast %93 : vector<1x16xf32> to vector<1x16xf32>
    %95 = vector.broadcast %94 : vector<1x16xf32> to vector<8x16xf32>
    %c0_31 = arith.constant 0 : index
    %c0_32 = arith.constant 0 : index
    %96 = vector.load %arg4[%c0_31, %c0_32] : memref<8x16xf32, #tpu.memory_space<vmem>>, vector<8x16xf32>
    tpu.vector_store %arg4[%c0_31, %c0_32], %95 {strides = array<i32>} : memref<8x16xf32, #tpu.memory_space<vmem>>, vector<8x16xf32>,
    return
  }
  func.func @transform_0(%arg0: i32) -> (i32, i32) {
    %c0_i32 = arith.constant 0 : i32
    %c0_i32_0 = arith.constant 0 : i32
    %c0_i32_1 = arith.constant 0 : i32
    return %c0_i32, %c0_i32_0 : i32, i32
  }
  func.func @transform_1(%arg0: i32) -> (i32, i32) {
    %c0_i32 = arith.constant 0 : i32
    %c0_i32_0 = arith.constant 0 : i32
    return %arg0, %c0_i32 : i32, i32
  }
  func.func @transform_2(%arg0: i32) -> (i32, i32) {
    %c0_i32 = arith.constant 0 : i32
    %c0_i32_0 = arith.constant 0 : i32
    return %arg0, %c0_i32 : i32, i32
  }
  func.func @transform_3(%arg0: i32) -> (i32, i32) {
    %c0_i32 = arith.constant 0 : i32
    %c0_i32_0 = arith.constant 0 : i32
    return %arg0, %c0_i32 : i32, i32
  }
}

</mosaic_0001>

<bundles_post_ra>
// kernel: tpu_custom_call.1
= control target key start
LH: loop header
LB: loop body
LE: loop exit
PB: predicated region body
PF: predicated region fallthrough
CT: control target
= control target key end

     0   :  { %s515_s0 = inlined_call_operand.<no memory space> [shape: f32[1,1], index: 0, kind: input, shape index: {}]   ;;  %s516_s1 = inlined_call_operand.vmem [shape: s32[13,1], index: 1, kind: input, shape index: {}]   ;;  %s517_s2 = inlined_call_operand.vmem [shape: f32[13,100], index: 2, kind: input, shape index: {}]   ;;  %s518_s3 = inlined_call_operand.hbm [shape: f32[8,16], index: 3, kind: output, shape index: {}]  }
   0x1   :  { %v18_v0 = vld [vmem:[%s516_s1] sm:$0xff] }
   0x2   :  { %9 = vsyncpa [#allocation4], 0  ;;  %v384_v1 = vmov 0   ;;  %v19_v2 = vld [vmem:[%s516_s1 + $0x8] sm:$0xff]  ;;  %v20_v3 = vlaneseq  ;;  %v418_v5 = vld [vmem:[%s517_s2] sm:$0xff]  ;;  %v31_v6 = vstv %s515_s0  ;;  %vm34_vm0 = vcmask 818176  }
   0x3   :  { %347 = vset.pattern.permute.xlu0 %v384_v1  ;;  %v435_v10 = vld [vmem:[%s517_s2 + $0x8] sm:$0xff]  ;;  %s385_s0 = smov [#allocation3]  }
   0x4   :  { %23 = vperm.xlu0 %347, %v18_v0   ;;  %v413_v4 = vand.u32 127, %v20_v3  ;;  %s337_s2 = sshll.u32 %s385_s0, 4  ;;  %s338_s2 = int_to_ptr.vmem [resolvable:$true] %s337_s2 }
   0x5   :  { %s360_s21 = scalar_lea.vmem %s338_s2, 128  ;;  %p365_p1 = scmp.lt.s32.totalorder %s338_s2, %s338_s2 }
   0x6   :  { %p361_p0 = scmp.ne.s32.totalorder %s338_s2, %s360_s21  ;;  %p366_p2 = scmp.lt.s32.totalorder %s360_s21, %s360_s21 }
   0x8   :  { %26 = vperm.xlu0 %347, %v19_v2   ;;  %p367_p3 = por %p366_p2, %p365_p1 }
   0xa   :  { %p368_p4 = pnand %p367_p3, %p361_p0 }
  0x83   :  { %v423_v7 = vpop.permute.xlu0 %23 }
  0x84   :  { %vm28_vm1 = vcmp.eq.s32.totalorder %v413_v4, %v423_v7 }
  0x85   :  { %v32_v8 = vsel %vm28_vm1, %v31_v6, %v418_v5 }
  0x86   :  { %v35_v9 = vsel %vm34_vm0, %v32_v8, -inf }
  0x87   :  { %v437_v11 = vpop.permute.xlu0 %26  ;;  %36 = vmax.xlane.f32.xlu1 %v35_v9 }
  0x88   :  { %vm29_vm2 = vcmp.eq.s32.totalorder %v413_v4, %v437_v11 }
  0x89   :  { %v33_v12 = vsel %vm29_vm2, %v31_v6, %v435_v10 }
  0x8a   :  { %v38_v13 = vsel %vm34_vm0, %v33_v12, -inf }
  0x8b   :  { %39 = vmax.xlane.f32.xlu1 %v38_v13 }
 0x114   :  { %v37_v14 = vpop.xlane.xlu1 %36 }
 0x115   :  { %vm41_vm3 = vcmp.eq.f32.partialorder %v32_v8, %v37_v14 }
 0x116   :  { %v43_v15 = vsel %vm41_vm3, %v413_v4, 4294967295 }
 0x117   :  { %v45_v16 = vsel %vm34_vm0, %v43_v15, 2147483648 }
 0x118   :  { %v40_v17 = vpop.xlane.xlu1 %39  ;;  %v47_v18 = vshra.s32 %v45_v16, 16  ;;  %v46_v24 = vand.u32 65535, %v45_v16 }
 0x119   :  { %vm42_vm4 = vcmp.eq.f32.partialorder %v33_v12, %v40_v17 }
 0x11a   :  { %v44_v19 = vsel %vm42_vm4, %v413_v4, 4294967295  ;;  %v49_v20 = vcvt.s32.f32 %v47_v18  ;;  %v48_v26 = vcvt.s32.f32 %v46_v24 }
 0x11b   :  { %v60_v21 = vsel %vm34_vm0, %v44_v19, 2147483648 }
 0x11c   :  { %50 = vmax.xlane.f32.xlu0 %v49_v20  ;;  %v62_v22 = vshra.s32 %v60_v21, 16  ;;  %v61_v27 = vand.u32 65535, %v60_v21 }
 0x11e   :  { %v64_v23 = vcvt.s32.f32 %v62_v22  ;;  %v63_v30 = vcvt.s32.f32 %v61_v27 }
 0x120   :  { %65 = vmax.xlane.f32.xlu1 %v64_v23 }
 0x1a9   :  { %v51_v25 = vpop.xlane.xlu0 %50 }
 0x1aa   :  { %vm52_vm5 = vcmp.eq.f32.partialorder %v49_v20, %v51_v25  ;;  %v57_v32 = vcvt.f32.s32 %v51_v25 }
 0x1ab   :  { %v53_v28 = vsel %vm52_vm5, %v48_v26, -inf }
 0x1ac   :  { %54 = vmax.xlane.f32.xlu1 %v53_v28  ;;  %v58_v34 = vshll.u32 %v57_v32, 16 }
 0x1ad   :  { %v66_v29 = vpop.xlane.xlu1 %65 }
 0x1ae   :  { %vm67_vm6 = vcmp.eq.f32.partialorder %v64_v23, %v66_v29  ;;  %v72_v35 = vcvt.f32.s32 %v66_v29 }
 0x1af   :  { %v68_v31 = vsel %vm67_vm6, %v63_v30, -inf }
 0x1b0   :  { %69 = vmax.xlane.f32.xlu1 %v68_v31  ;;  %v73_v39 = vshll.u32 %v72_v35, 16 }
 0x239   :  { %v55_v33 = vpop.xlane.xlu1 %54 }
 0x23a   :  { %v56_v36 = vcvt.f32.s32 %v55_v33 }
 0x23c   :  { %v59_v37 = vadd.s32 %v58_v34, %v56_v36 }
 0x23d   :  { %v70_v38 = vpop.xlane.xlu1 %69 }
 0x23e   :  { %v71_v40 = vcvt.f32.s32 %v70_v38  ;;  %vm75_vm7 = vcmp.eq.s32.totalorder %v413_v4, %v59_v37 }
 0x23f   :  { %v77_v41 = vsel %vm75_vm7, -1e+30, %v32_v8 }
 0x240   :  { %v74_v42 = vadd.s32 %v73_v39, %v71_v40  ;;  %v79_v43 = vsel %vm34_vm0, %v77_v41, -inf }
 0x241   :  { %80 = vmax.xlane.f32.xlu1 %v79_v43 }
 0x242   :  { %vm76_vm8 = vcmp.eq.s32.totalorder %v413_v4, %v74_v42 }
 0x243   :  { %v78_v44 = vsel %vm76_vm8, -1e+30, %v33_v12 }
 0x244   :  { %v82_v45 = vsel %vm34_vm0, %v78_v44, -inf }
 0x245   :  { %83 = vmax.xlane.f32.xlu1 %v82_v45 }
 0x2ce   :  { %v81_v46 = vpop.xlane.xlu1 %80 }
 0x2cf   :  { %vm85_vm9 = vcmp.eq.f32.partialorder %v77_v41, %v81_v46 }
 0x2d0   :  { %v87_v47 = vsel %vm85_vm9, %v413_v4, 4294967295 }
 0x2d1   :  { %v89_v48 = vsel %vm34_vm0, %v87_v47, 2147483648 }
 0x2d2   :  { %v84_v49 = vpop.xlane.xlu1 %83  ;;  %v91_v50 = vshra.s32 %v89_v48, 16  ;;  %v90_v56 = vand.u32 65535, %v89_v48 }
 0x2d3   :  { %vm86_vm10 = vcmp.eq.f32.partialorder %v78_v44, %v84_v49 }
 0x2d4   :  { %v88_v51 = vsel %vm86_vm10, %v413_v4, 4294967295  ;;  %v93_v52 = vcvt.s32.f32 %v91_v50  ;;  %v92_v58 = vcvt.s32.f32 %v90_v56 }
 0x2d5   :  { %v104_v53 = vsel %vm34_vm0, %v88_v51, 2147483648 }
 0x2d6   :  { %94 = vmax.xlane.f32.xlu1 %v93_v52  ;;  %v106_v54 = vshra.s32 %v104_v53, 16  ;;  %v105_v59 = vand.u32 65535, %v104_v53 }
 0x2d8   :  { %v108_v55 = vcvt.s32.f32 %v106_v54  ;;  %v107_v62 = vcvt.s32.f32 %v105_v59 }
 0x2da   :  { %109 = vmax.xlane.f32.xlu1 %v108_v55 }
 0x363   :  { %v95_v57 = vpop.xlane.xlu1 %94 }
 0x364   :  { %vm96_vm11 = vcmp.eq.f32.partialorder %v93_v52, %v95_v57  ;;  %v101_v0 = vcvt.f32.s32 %v95_v57 }
 0x365   :  { %v97_v60 = vsel %vm96_vm11, %v92_v58, -inf }
 0x366   :  { %98 = vmax.xlane.f32.xlu1 %v97_v60  ;;  %v102_v2 = vshll.u32 %v101_v0, 16 }
 0x367   :  { %v110_v61 = vpop.xlane.xlu1 %109 }
 0x368   :  { %vm111_vm12 = vcmp.eq.f32.partialorder %v108_v55, %v110_v61  ;;  %v116_v6 = vcvt.f32.s32 %v110_v61 }
 0x369   :  { %v112_v63 = vsel %vm111_vm12, %v107_v62, -inf }
 0x36a   :  { %113 = vmax.xlane.f32.xlu0 %v112_v63  ;;  %v117_v13 = vshll.u32 %v116_v6, 16 }
 0x3f3   :  { %v99_v1 = vpop.xlane.xlu1 %98 }
 0x3f4   :  { %v100_v8 = vcvt.f32.s32 %v99_v1 }
 0x3f6   :  { %v103_v9 = vadd.s32 %v102_v2, %v100_v8 }
 0x3f7   :  { %v114_v12 = vpop.xlane.xlu0 %113 }
 0x3f8   :  { %v115_v14 = vcvt.f32.s32 %v114_v12  ;;  %vm119_vm13 = vcmp.eq.s32.totalorder %v413_v4, %v103_v9 }
 0x3f9   :  { %v121_v15 = vsel %vm119_vm13, -1e+30, %v77_v41 }
 0x3fa   :  { %v118_v16 = vadd.s32 %v117_v13, %v115_v14  ;;  %v123_v17 = vsel %vm34_vm0, %v121_v15, -inf }
 0x3fb   :  { %124 = vmax.xlane.f32.xlu1 %v123_v17 }
 0x3fc   :  { %vm120_vm14 = vcmp.eq.s32.totalorder %v413_v4, %v118_v16 }
 0x3fd   :  { %v122_v18 = vsel %vm120_vm14, -1e+30, %v78_v44 }
 0x3fe   :  { %v126_v19 = vsel %vm34_vm0, %v122_v18, -inf }
 0x3ff   :  { %127 = vmax.xlane.f32.xlu0 %v126_v19 }
 0x488   :  { %v125_v20 = vpop.xlane.xlu1 %124 }
 0x489   :  { %vm129_vm15 = vcmp.eq.f32.partialorder %v121_v15, %v125_v20 }
 0x48a   :  { %v131_v21 = vsel %vm129_vm15, %v413_v4, 4294967295 }
 0x48b   :  { %v133_v22 = vsel %vm34_vm0, %v131_v21, 2147483648 }
 0x48c   :  { %v128_v23 = vpop.xlane.xlu0 %127  ;;  %v135_v24 = vshra.s32 %v133_v22, 16  ;;  %v134_v30 = vand.u32 65535, %v133_v22 }
 0x48d   :  { %vm130_vm3 = vcmp.eq.f32.partialorder %v122_v18, %v128_v23 }
 0x48e   :  { %v132_v25 = vsel %vm130_vm3, %v413_v4, 4294967295  ;;  %v137_v26 = vcvt.s32.f32 %v135_v24  ;;  %v136_v32 = vcvt.s32.f32 %v134_v30 }
 0x48f   :  { %v148_v27 = vsel %vm34_vm0, %v132_v25, 2147483648 }
 0x490   :  { %138 = vmax.xlane.f32.xlu1 %v137_v26  ;;  %v150_v28 = vshra.s32 %v148_v27, 16  ;;  %v149_v33 = vand.u32 65535, %v148_v27 }
 0x492   :  { %v152_v29 = vcvt.s32.f32 %v150_v28  ;;  %v151_v36 = vcvt.s32.f32 %v149_v33 }
 0x494   :  { %153 = vmax.xlane.f32.xlu0 %v152_v29 }
 0x51d   :  { %v139_v31 = vpop.xlane.xlu1 %138 }
 0x51e   :  { %vm140_vm4 = vcmp.eq.f32.partialorder %v137_v26, %v139_v31  ;;  %v145_v38 = vcvt.f32.s32 %v139_v31 }
 0x51f   :  { %v141_v34 = vsel %vm140_vm4, %v136_v32, -inf }
 0x520   :  { %142 = vmax.xlane.f32.xlu1 %v141_v34  ;;  %v146_v40 = vshll.u32 %v145_v38, 16 }
 0x521   :  { %v154_v35 = vpop.xlane.xlu0 %153 }
 0x522   :  { %vm155_vm5 = vcmp.eq.f32.partialorder %v152_v29, %v154_v35  ;;  %v160_v41 = vcvt.f32.s32 %v154_v35 }
 0x523   :  { %v156_v37 = vsel %vm155_vm5, %v151_v36, -inf }
 0x524   :  { %157 = vmax.xlane.f32.xlu0 %v156_v37  ;;  %v161_v45 = vshll.u32 %v160_v41, 16  ;;  %v257_v41 = vsel %vm28_vm1, %v418_v5, 0.0 }
 0x5ad   :  { %v143_v39 = vpop.xlane.xlu1 %142 }
 0x5ae   :  { %v144_v42 = vcvt.f32.s32 %v143_v39 }
 0x5b0   :  { %v147_v43 = vadd.s32 %v146_v40, %v144_v42 }
 0x5b1   :  { %v158_v44 = vpop.xlane.xlu0 %157 }
 0x5b2   :  { %v159_v46 = vcvt.f32.s32 %v158_v44  ;;  %vm163_vm6 = vcmp.eq.s32.totalorder %v413_v4, %v147_v43 }
 0x5b3   :  { %v165_v47 = vsel %vm163_vm6, -1e+30, %v121_v15 }
 0x5b4   :  { %v162_v48 = vadd.s32 %v161_v45, %v159_v46  ;;  %v167_v49 = vsel %vm34_vm0, %v165_v47, -inf  ;;  %v259_v45 = vsel %vm34_vm0, %v257_v41, 0.0  ;;  %v258_v46 = vsel %vm29_vm2, %v435_v10, 0.0 }
 0x5b5   :  { %168 = vmax.xlane.f32.xlu1 %v167_v49 }
 0x5b6   :  { %vm164_vm7 = vcmp.eq.s32.totalorder %v413_v4, %v162_v48 }
 0x5b7   :  { %v166_v50 = vsel %vm164_vm7, -1e+30, %v122_v18  ;;  %vm329_vm7 = vcmask 130048  }
 0x5b8   :  { %v170_v51 = vsel %vm34_vm0, %v166_v50, -inf }
 0x5b9   :  { %171 = vmax.xlane.f32.xlu0 %v170_v51 }
 0x642   :  { %v169_v52 = vpop.xlane.xlu1 %168 }
 0x643   :  { %vm173_vm8 = vcmp.eq.f32.partialorder %v165_v47, %v169_v52 }
 0x644   :  { %v175_v53 = vsel %vm173_vm8, %v413_v4, 4294967295 }
 0x645   :  { %v177_v54 = vsel %vm34_vm0, %v175_v53, 2147483648 }
 0x646   :  { %v172_v55 = vpop.xlane.xlu0 %171  ;;  %v179_v56 = vshra.s32 %v177_v54, 16  ;;  %v178_v62 = vand.u32 65535, %v177_v54 }
 0x647   :  { %vm174_vm9 = vcmp.eq.f32.partialorder %v166_v50, %v172_v55 }
 0x648   :  { %v176_v57 = vsel %vm174_vm9, %v413_v4, 4294967295  ;;  %v181_v58 = vcvt.s32.f32 %v179_v56  ;;  %v180_v0 = vcvt.s32.f32 %v178_v62 }
 0x649   :  { %v192_v59 = vsel %vm34_vm0, %v176_v57, 2147483648 }
 0x64a   :  { %182 = vmax.xlane.f32.xlu1 %v181_v58  ;;  %v194_v60 = vshra.s32 %v192_v59, 16  ;;  %v193_v1 = vand.u32 65535, %v192_v59 }
 0x64c   :  { %v196_v61 = vcvt.s32.f32 %v194_v60  ;;  %v195_v8 = vcvt.s32.f32 %v193_v1 }
 0x64e   :  { %197 = vmax.xlane.f32.xlu0 %v196_v61 }
 0x6d7   :  { %v183_v63 = vpop.xlane.xlu1 %182 }
 0x6d8   :  { %vm184_vm10 = vcmp.eq.f32.partialorder %v181_v58, %v183_v63  ;;  %v189_v12 = vcvt.f32.s32 %v183_v63 }
 0x6d9   :  { %v185_v2 = vsel %vm184_vm10, %v180_v0, -inf }
 0x6da   :  { %186 = vmax.xlane.f32.xlu1 %v185_v2  ;;  %v190_v14 = vshll.u32 %v189_v12, 16 }
 0x6db   :  { %v198_v6 = vpop.xlane.xlu0 %197 }
 0x6dc   :  { %vm199_vm11 = vcmp.eq.f32.partialorder %v196_v61, %v198_v6  ;;  %v204_v15 = vcvt.f32.s32 %v198_v6 }
 0x6dd   :  { %v200_v9 = vsel %vm199_vm11, %v195_v8, -inf }
 0x6de   :  { %201 = vmax.xlane.f32.xlu0 %v200_v9  ;;  %v205_v19 = vshll.u32 %v204_v15, 16 }
 0x767   :  { %v187_v13 = vpop.xlane.xlu1 %186 }
 0x768   :  { %v188_v16 = vcvt.f32.s32 %v187_v13 }
 0x76a   :  { %v191_v17 = vadd.s32 %v190_v14, %v188_v16 }
 0x76b   :  { %v202_v18 = vpop.xlane.xlu0 %201 }
 0x76c   :  { %v203_v20 = vcvt.f32.s32 %v202_v18  ;;  %vm207_vm12 = vcmp.eq.s32.totalorder %v413_v4, %v191_v17 }
 0x76d   :  { %v209_v21 = vsel %vm207_vm12, -1e+30, %v165_v47  ;;  %v262_v47 = vsel %vm34_vm0, %v258_v46, 0.0 }
 0x76e   :  { %v206_v22 = vadd.s32 %v205_v19, %v203_v20  ;;  %v211_v23 = vsel %vm34_vm0, %v209_v21, -inf }
 0x76f   :  { %212 = vmax.xlane.f32.xlu1 %v211_v23 }
 0x770   :  { %vm208_vm13 = vcmp.eq.s32.totalorder %v413_v4, %v206_v22 }
 0x771   :  { %v210_v24 = vsel %vm208_vm13, -1e+30, %v166_v50 }
 0x772   :  { %v214_v25 = vsel %vm34_vm0, %v210_v24, -inf }
 0x773   :  { %215 = vmax.xlane.f32.xlu0 %v214_v25 }
 0x7fc   :  { %v213_v26 = vpop.xlane.xlu1 %212 }
 0x7fd   :  { %vm217_vm14 = vcmp.eq.f32.partialorder %v209_v21, %v213_v26 }
 0x7fe   :  { %v219_v27 = vsel %vm217_vm14, %v413_v4, 4294967295 }
 0x7ff   :  { %v221_v28 = vsel %vm34_vm0, %v219_v27, 2147483648 }
 0x800   :  { %v216_v29 = vpop.xlane.xlu0 %215  ;;  %v223_v30 = vshra.s32 %v221_v28, 16  ;;  %v222_v36 = vand.u32 65535, %v221_v28 }
 0x801   :  { %vm218_vm15 = vcmp.eq.f32.partialorder %v210_v24, %v216_v29 }
 0x802   :  { %v220_v31 = vsel %vm218_vm15, %v413_v4, 4294967295  ;;  %v225_v32 = vcvt.s32.f32 %v223_v30  ;;  %v224_v38 = vcvt.s32.f32 %v222_v36  ;;  %v306_v30 = vshrl.u32 %v20_v3, 7 }
 0x803   :  { %v236_v33 = vsel %vm34_vm0, %v220_v31, 2147483648  ;;  %v309_v31 = vadd.s32 4294967288, %v413_v4 }
 0x804   :  { %226 = vmax.xlane.f32.xlu1 %v225_v32  ;;  %v238_v34 = vshra.s32 %v236_v33, 16  ;;  %v237_v39 = vand.u32 65535, %v236_v33 }
 0x805   :  { %v312_v36 = vsub.s32 %v309_v31, %v306_v30 }
 0x806   :  { %v240_v35 = vcvt.s32.f32 %v238_v34  ;;  %v239_v43 = vcvt.s32.f32 %v237_v39 }
 0x808   :  { %241 = vmax.xlane.f32.xlu0 %v240_v35 }
 0x891   :  { %v227_v37 = vpop.xlane.xlu1 %226 }
 0x892   :  { %vm228_vm3 = vcmp.eq.f32.partialorder %v225_v32, %v227_v37  ;;  %v233_v48 = vcvt.f32.s32 %v227_v37 }
 0x893   :  { %v229_v40 = vsel %vm228_vm3, %v224_v38, -inf }
 0x894   :  { %230 = vmax.xlane.f32.xlu1 %v229_v40  ;;  %v234_v7 = vshll.u32 %v233_v48, 16 }
 0x895   :  { %v242_v42 = vpop.xlane.xlu0 %241 }
 0x896   :  { %vm243_vm4 = vcmp.eq.f32.partialorder %v240_v35, %v242_v42  ;;  %v248_v50 = vcvt.f32.s32 %v242_v42  ;;  %v307_v35 = vsub.s32 %v413_v4, %v306_v30 }
 0x897   :  { %v244_v44 = vsel %vm243_vm4, %v239_v43, -inf }
 0x898   :  { %245 = vmax.xlane.f32.xlu0 %v244_v44  ;;  %260 = vadd.xlane.f32.xlu1 %v259_v45  ;;  %v249_v55 = vshll.u32 %v248_v50, 16 }
 0x89c   :  { %263 = vadd.xlane.f32.xlu0 %v262_v47 }
 0x921   :  { %v231_v49 = vpop.xlane.xlu1 %230 }
 0x922   :  { %v232_v51 = vcvt.f32.s32 %v231_v49 }
 0x924   :  { %v235_v52 = vadd.s32 %v234_v7, %v232_v51 }
 0x925   :  { %v246_v53 = vpop.xlane.xlu0 %245  ;;  %v261_v54 = vpop.xlane.xlu1 %260 }
 0x926   :  { %v247_v56 = vcvt.f32.s32 %v246_v53  ;;  %v265_v57 = vsub.f32 %v418_v5, %v261_v54  ;;  %vm251_vm1 = vcmp.eq.s32.totalorder %v413_v4, %v235_v52 }
 0x927   :  { %v253_v58 = vsel %vm251_vm1, -1e+30, %v209_v21 }
 0x928   :  { %v250_v11 = vadd.s32 %v249_v55, %v247_v56  ;;  %vm255_vm2 = vcmp.gt.f32.partialorder %v253_v58, -1e+30 }
 0x929   :  { %v264_v59 = vpop.xlane.xlu0 %263  ;;  %v267_v60 = vsel %vm255_vm2, %v265_v57, -1e+30 }
 0x92a   :  { %v266_v61 = vsub.f32 %v435_v10, %v264_v59  ;;  %v269_v62 = vsel %vm34_vm0, %v267_v60, -inf  ;;  %vm252_vm5 = vcmp.eq.s32.totalorder %v413_v4, %v250_v11 }
 0x92b   :  { %270 = vmax.xlane.f32.xlu1 %v269_v62  ;;  %v254_v63 = vsel %vm252_vm5, -1e+30, %v210_v24 }
 0x92c   :  { %vm256_vm6 = vcmp.gt.f32.partialorder %v254_v63, -1e+30 }
 0x92d   :  { %v268_v0 = vsel %vm256_vm6, %v266_v61, -1e+30 }
 0x92e   :  { %v272_v1 = vsel %vm34_vm0, %v268_v0, -inf }
 0x92f   :  { %273 = vmax.xlane.f32.xlu0 %v272_v1 }
 0x9b8   :  { %v271_v5 = vpop.xlane.xlu1 %270 }
 0x9b9   :  { %v275_v2 = vmax.f32 %v271_v5, 0.0 }
 0x9bb   :  { %v277_v6 = vsub.f32 %v267_v60, %v275_v2  ;;  %v289_v18 = vsub.f32 0.0, %v275_v2 }
 0x9bc   :  { %v274_v8 = vpop.xlane.xlu0 %273 }
 0x9bd   :  { %v279_v9 = vmul.f32 1.442695, %v277_v6  ;;  %v276_v12 = vmax.f32 %v274_v8, 0.0  ;;  %v291_v19 = vmul.f32 1.442695, %v289_v18 }
 0x9bf   :  { %348 = vpow2.f32 %v279_v9  ;;  %v278_v13 = vsub.f32 %v268_v0, %v276_v12  ;;  %v290_v20 = vsub.f32 0.0, %v276_v12 }
 0x9c1   :  { %v281_v10 = vmul.f32 1.442695, %v278_v13  ;;  %v293_v21 = vmul.f32 1.442695, %v290_v20 }
 0x9c3   :  { %350 = vpow2.f32 %v281_v10 }
 0x9c4   :  { %352 = vpow2.f32 %v291_v19 }
 0x9c5   :  { %354 = vpow2.f32 %v293_v21 }
 0x9c9   :  { %v349_v14 = vpop.eup %348 }
 0x9ca   :  { %v283_v15 = vsel %vm34_vm0, %v349_v14, 0.0 }
 0x9cb   :  { %284 = vadd.xlane.f32.xlu1 %v283_v15 }
 0x9cd   :  { %v351_v16 = vpop.eup %350 }
 0x9ce   :  { %v286_v17 = vsel %vm34_vm0, %v351_v16, 0.0  ;;  %v353_v22 = vpop.eup %352  ;;  %vm314_vm0 = vcmask 130112  }
 0x9cf   :  { %287 = vadd.xlane.f32.xlu0 %v286_v17  ;;  %v355_v25 = vpop.eup %354 }
 0xa58   :  { %v285_v23 = vpop.xlane.xlu1 %284 }
 0xa59   :  { %v295_v24 = vadd.f32 %v353_v22, %v285_v23 }
 0xa5b   :  { %356 = vlog2.f32 %v295_v24 }
 0xa5c   :  { %v288_v26 = vpop.xlane.xlu0 %287 }
 0xa5d   :  { %v296_v27 = vadd.f32 %v355_v25, %v288_v26 }
 0xa5f   :  { %358 = vlog2.f32 %v296_v27 }
 0xa65   :  { %v357_v28 = vpop.eup %356 }
 0xa66   :  { %v298_v29 = vmul.f32 0.6931472, %v357_v28 }
 0xa68   :  { %v301_v33 = vadd.f32 %v298_v29, %v275_v2 }
 0xa69   :  { %v359_v32 = vpop.eup %358 }
 0xa6a   :  { %v300_v34 = vmul.f32 0.6931472, %v359_v32  ;;  %v308_v38 = vrot.slane %v301_v33, %v307_v35 }
 0xa6c   :  { %v302_v37 = vadd.f32 %v300_v34, %v276_v12 }
 0xa6e   :  { %v313_v39 = vrot.slane %v302_v37, %v312_v36 }
 0xa70   :  { %v315_v40 = vsel %vm314_vm0, %v313_v39, %v308_v38 }
 0xa71   :  { %330 = vst.msk [vmem:[#allocation3] sm:$0xff] %vm329_vm7, %v315_v40 }
 0xa72   :  { %371 = shalt.err (!%p368_p4)
}
 0xa73   :  { %s372_s24 = scalar_lea.hbm %s518_s3, 128 }
 0xa74   :  { %p373_p5 = scmp.ne.s32.totalorder %s518_s3, %s372_s24  ;;  %p376_p6 = scmp.lt.u32.totalorder %s372_s24, %s518_s3 }
 0xa76   :  { %p378_p7 = pnand %p376_p6, %p373_p5 }
 0xa78   :  { %381 = shalt.err (!%p378_p7)
}
 0xa79   :  { %340 = dma.vmem_to_hbm [thread:$0]  %s338_s2, 128, %s518_s3, [#allocation4]  }
 0xa7a   :  { %382 = dma.done.wait [#allocation4], 128  }
 0xa7b   :  { %383 = vsyncadd [#allocation4], 4294967168 }
 0xa7c   :  { %344 = vsyncpa [#allocation4], 1 }

</bundles_post_ra>
